<compile_context>
chip_gen: v7x
topology: tpu7x:2x2x1
jax: 0.10.0
libtpu: 0.0.40
codegen_flags: <defaults>
</compile_context>

<pallas_src>
import math

import jax
import jax.numpy as jnp
from jax.experimental import pallas as pl
from jax.experimental.pallas import tpu as pltpu


def _round_up(x, m):
    return ((x + m - 1) // m) * m


def _cdiv(a, b):
    return -(-a // b)


def _choose_pack(n_features, rows):
    """Lane-dense packing factor: fold `pack` logical rows into one physical row
    so the last (lane) dim becomes pack*n_features (ideally 128).  Must divide
    `rows` exactly so the reshape is a pure layout identity."""
    if n_features <= 0 or rows <= 0 or 128 % n_features != 0:
        return 1
    pack = 128 // n_features          # power of two, since 128 = 2**7
    while pack > 1 and rows % pack != 0:
        pack //= 2
    return max(pack, 1)


def _block_diag(w, pack):
    """(F, H) -> block-diagonal (pack*F, pack*H).  Extra terms are exact zeros,
    so packed results are numerically identical to the unpacked matmul."""
    if pack == 1:
        return w
    return jnp.kron(jnp.eye(pack, dtype=w.dtype), w)


def _make_ff_kernel(n_layers):
    """Fused (Linear -> tanh) x n_layers over one row tile; activations stay in VMEM."""

    def kernel(*refs):
        # refs = (x_ref, w0, b0, w1, b1, ..., out_ref)
        x_ref = refs[0]
        out_ref = refs[-1]
        h = x_ref[...]                          # (TILE, pack*F0), native dtype
        for l in range(n_layers):
            w = refs[1 + 2 * l][...]            # (pack*F_l, pack*H_l) == blkdiag(W^T)
            b = refs[2 + 2 * l][...]            # (1, pack*H_l)
            h = jnp.tanh(jnp.dot(h, w, preferred_element_type=jnp.float32) + b)
        out_ref[...] = h.astype(out_ref.dtype)

    return kernel


@jax.jit
def ff_forward(features, weights, biases):
    """Pallas implementation of FF.forward.

    features : (batch, n_samples, n_features) or (batch, n_features)
    weights  : list of (out_l, in_l) PyTorch-layout Linear weights
    biases   : list of (out_l,) Linear biases
    """
    if not weights:                      # degenerate FF([], ...) -> identity
        return features

    orig_shape = features.shape
    n_features = orig_shape[-1]
    rows = math.prod(orig_shape[:-1])
    in_dtype = features.dtype

    n_layers = len(weights)
    out_dim = weights[-1].shape[0]

    # ---- lane-dense packing (pure layout identity on row-major data) --------
    pack = _choose_pack(n_features, rows)
    rows_p = rows // pack
    x2d = features.reshape(rows_p, pack * n_features)      # native dtype, no upcast

    wts = [_block_diag(jnp.transpose(w, (1, 0)).astype(jnp.float32), pack)
           for w in weights]                                # (pack*F_l, pack*H_l)
    bss = [jnp.tile(b.reshape(1, -1).astype(jnp.float32), (1, pack))
           for b in biases]                                 # (1, pack*H_l)
    packed_out = pack * out_dim

    # ---- row tiling ----------------------------------------------------------
    # Big tiles amortize the ~0.35 us per-grid-step overhead; keep a multiple of 8
    # (sublane rule).  Split into >= 2 tiles when possible so the "parallel" axis
    # can shard across v7x's two TensorCores.  No padding: Pallas handles the
    # ragged last block (rows are independent; OOB writes are dropped).
    tile = min(2048, _round_up(rows_p, 8))
    if rows_p > 8:
        tile = min(tile, _round_up(_cdiv(rows_p, 2), 8))
    n_tiles = _cdiv(rows_p, tile)

    in_specs = [pl.BlockSpec((tile, pack * n_features), lambda i: (i, 0))]
    for w in wts:
        f_l, h_l = w.shape
        in_specs.append(pl.BlockSpec((f_l, h_l), lambda i: (0, 0)))   # resident weight
        in_specs.append(pl.BlockSpec((1, h_l), lambda i: (0, 0)))     # resident bias
    wb_flat = [a for wb in zip(wts, bss) for a in wb]

    # ---- cost estimate (advisory, helps XLA schedule around the custom call) -
    in_dims = [n_features] + [w.shape[0] for w in weights[:-1]]
    out_dims = [w.shape[0] for w in weights]
    itemsize = jnp.dtype(in_dtype).itemsize
    cost = pl.CostEstimate(
        flops=int(2 * rows * pack * sum(f * h for f, h in zip(in_dims, out_dims))),
        transcendentals=int(rows * sum(out_dims)),
        bytes_accessed=int(rows * (n_features + out_dim) * itemsize
                           + sum(w.size * 4 + b.size * 4 for w, b in zip(wts, bss))),
    )

    out2d = pl.pallas_call(
        _make_ff_kernel(n_layers),
        out_shape=jax.ShapeDtypeStruct((rows_p, packed_out), in_dtype),
        grid=(n_tiles,),
        in_specs=in_specs,
        out_specs=pl.BlockSpec((tile, packed_out), lambda i: (i, 0)),
        compiler_params=pltpu.CompilerParams(
            dimension_semantics=("parallel",),       # independent row tiles
            vmem_limit_bytes=32 * 1024 * 1024,       # explicit, safe on v5e..v7x
        ),
        cost_estimate=cost,
    )(x2d, *wb_flat)

    # (rows_p, pack*out_dim) -> (..., out_dim) is again a pure layout identity.
    return out2d.reshape(orig_shape[:-1] + (out_dim,))


def _ff_reference(features, weights, biases):
    """Pure-JAX reference matching the PyTorch FF.forward."""
    out = features.astype(jnp.float32)
    for w, b in zip(weights, biases):
        out = jnp.tanh(out @ w.T + b)
    return out


def _init_ff_params(key, n_features, hidden_sizes):
    """PyTorch nn.Linear default init: uniform(-1/sqrt(fan_in), 1/sqrt(fan_in))."""
    weights, biases = [], []
    fan_in = n_features
    for h in hidden_sizes:
        key, kw, kb = jax.random.split(key, 3)
        bound = 1.0 / math.sqrt(fan_in)
        weights.append(
            jax.random.uniform(kw, (h, fan_in), minval=-bound, maxval=bound,
                               dtype=jnp.float32))
        biases.append(
            jax.random.uniform(kb, (h,), minval=-bound, maxval=bound,
                               dtype=jnp.float32))
        fan_in = h
    return weights, biases, key


if __name__ == "__main__":
    batch, n_samples, n_features = 2, 8, 32
    key = jax.random.PRNGKey(0)

    # --- default config: hidden_size=[16], 3-D input -------------------------
    hidden_sizes = [16]
    weights, biases, key = _init_ff_params(key, n_features, hidden_sizes)

    key, kx = jax.random.split(key)
    features = jax.random.normal(kx, (batch, n_samples, n_features), dtype=jnp.float32)

    out = jax.block_until_ready(ff_forward(features, weights, biases))
    ref = _ff_reference(features, weights, biases)
    assert out.shape == (batch, n_samples, hidden_sizes[-1]), out.shape
    assert jnp.allclose(out, ref, atol=2e-5, rtol=1e-5), \
        float(jnp.max(jnp.abs(out - ref)))

    # --- two stacked layers, exercises in-kernel fusion ----------------------
    hidden_sizes2 = [64, 16]
    weights2, biases2, key = _init_ff_params(key, n_features, hidden_sizes2)
    out2 = jax.block_until_ready(ff_forward(features, weights2, biases2))
    ref2 = _ff_reference(features, weights2, biases2)
    assert out2.shape == (batch, n_samples, hidden_sizes2[-1]), out2.shape
    assert jnp.allclose(out2, ref2, atol=2e-5, rtol=1e-5), \
        float(jnp.max(jnp.abs(out2 - ref2)))

    # --- 2-D input path (batch, n_features) ----------------------------------
    key, kx2 = jax.random.split(key)
    features2d = jax.random.normal(kx2, (batch, n_features), dtype=jnp.float32)
    out3 = jax.block_until_ready(ff_forward(features2d, weights, biases))
    ref3 = _ff_reference(features2d, weights, biases)
    assert out3.shape == (batch, hidden_sizes[-1]), out3.shape
    assert jnp.allclose(out3, ref3, atol=2e-5, rtol=1e-5), \
        float(jnp.max(jnp.abs(out3 - ref3)))

    print("KERNEL_OK")
</pallas_src>

<mosaic_0001>
module attributes {stable_mosaic.version = 11 : i64} {
  func.func @kernel(%arg0: i32, %arg1: memref<8x128xf32, #tpu.memory_space<vmem>>, %arg2: memref<128x64xf32, #tpu.memory_space<vmem>>, %arg3: memref<1x64xf32, #tpu.memory_space<vmem>>, %arg4: memref<8x64xf32, #tpu.memory_space<vmem>>) attributes {dimension_semantics = [#tpu.dimension_semantics<parallel>], iteration_bounds = array<i64: 1>, scalar_prefetch = 0 : i64, scratch_operands = 0 : i64, tpu.core_type = #tpu.core_type<tc>, window_params = [{transform_indices = @transform_0, window_bounds = array<i64: 8, 128>}, {pipeline_mode = #tpu.pipeline_mode<synchronous>, transform_indices = @transform_1, window_bounds = array<i64: 128, 64>}, {pipeline_mode = #tpu.pipeline_mode<synchronous>, transform_indices = @transform_2, window_bounds = array<i64: 1, 64>}, {transform_indices = @transform_3, window_bounds = array<i64: 8, 64>}]} {
    %c0 = arith.constant 0 : index
    %c0_0 = arith.constant 0 : index
    %0 = vector.load %arg1[%c0, %c0_0] : memref<8x128xf32, #tpu.memory_space<vmem>>, vector<8x128xf32>
    %c0_1 = arith.constant 0 : index
    %c0_2 = arith.constant 0 : index
    %1 = vector.load %arg2[%c0_1, %c0_2] : memref<128x64xf32, #tpu.memory_space<vmem>>, vector<128x64xf32>
    %c0_3 = arith.constant 0 : index
    %c0_4 = arith.constant 0 : index
    %2 = vector.load %arg3[%c0_3, %c0_4] : memref<1x64xf32, #tpu.memory_space<vmem>>, vector<1x64xf32>
    %cst = arith.constant dense<0.000000e+00> : vector<8x64xf32>
    %3 = tpu.matmul %0, %1, %cst {dimension_numbers = #tpu.dot_dimension_numbers<[1], [0], [0], [1], [0, 0, 1, 1], [], []>} : vector<8x128xf32>, vector<128x64xf32>, vector<8x64xf32> -> vector<8x64xf32>
    %4 = vector.broadcast %2 : vector<1x64xf32> to vector<8x64xf32>
    %5 = arith.addf %3, %4 : vector<8x64xf32>
    %6 = math.tanh %5 : vector<8x64xf32>
    %c0_5 = arith.constant 0 : index
    %c0_6 = arith.constant 0 : index
    %7 = vector.load %arg4[%c0_5, %c0_6] : memref<8x64xf32, #tpu.memory_space<vmem>>, vector<8x64xf32>
    tpu.vector_store %arg4[%c0_5, %c0_6], %6 {strides = array<i32>} : memref<8x64xf32, #tpu.memory_space<vmem>>, vector<8x64xf32>,
    return
  }
  func.func @transform_0(%arg0: i32) -> (i32, i32) {
    %c0_i32 = arith.constant 0 : i32
    %c0_i32_0 = arith.constant 0 : i32
    return %arg0, %c0_i32 : i32, i32
  }
  func.func @transform_1(%arg0: i32) -> (i32, i32) {
    %c0_i32 = arith.constant 0 : i32
    %c0_i32_0 = arith.constant 0 : i32
    %c0_i32_1 = arith.constant 0 : i32
    return %c0_i32, %c0_i32_0 : i32, i32
  }
  func.func @transform_2(%arg0: i32) -> (i32, i32) {
    %c0_i32 = arith.constant 0 : i32
    %c0_i32_0 = arith.constant 0 : i32
    %c0_i32_1 = arith.constant 0 : i32
    return %c0_i32, %c0_i32_0 : i32, i32
  }
  func.func @transform_3(%arg0: i32) -> (i32, i32) {
    %c0_i32 = arith.constant 0 : i32
    %c0_i32_0 = arith.constant 0 : i32
    return %arg0, %c0_i32 : i32, i32
  }
}

</mosaic_0001>

<bundles_post_ra>
// kernel: ff_forward.1
= control target key start
LH: loop header
LB: loop body
LE: loop exit
PB: predicated region body
PF: predicated region fallthrough
CT: control target
= control target key end

     0   :  { %v232_v3 = vmov 0.0|0.0   ;;  %vm233_vm0 = vmmov 0   ;;  %v234_v6 = vmov 0.0   ;;  %vm109_vm1 = vcmask 523264   ;;  %s312_s0 = inlined_call_operand.vmem [shape: f32[4,128], index: 0, kind: input, shape index: {}]   ;;  %s313_s1 = inlined_call_operand.vmem [shape: f32[128,64], index: 1, kind: input, shape index: {}]   ;;  %s314_s2 = inlined_call_operand.vmem [shape: f32[1,64], index: 2, kind: input, shape index: {}]   ;;  %s315_s3 = inlined_call_operand.vmem [shape: f32[4,64], index: 3, kind: output, shape index: {}]  }
   0x1   :  { %v15_v0 = vld [vmem:[%s313_s1] sm:$0xff]  ;;  %v16_v1 = vld [vmem:[%s313_s1 + $0x8] sm:$0xff]  ;;  %v17_v2 = vld [vmem:[%s313_s1 + $0x10] sm:$0xff]  ;;  %203 = vmatprep.subr.bf16.mxu0 %v232_v3  ;;  %200 = vmatprep.mubr.msk.f32.mxu0 %vm233_vm0, %v234_v6 }
   0x2   :  { %v204_v4 = vpack.c.bf16 %v16_v1, %v15_v0  ;;  %v18_v5 = vld [vmem:[%s313_s1 + $0x18] sm:$0xff]  ;;  %v19_v8 = vld [vmem:[%s313_s1 + $0x20] sm:$0xff]  ;;  %v20_v9 = vld [vmem:[%s313_s1 + $0x28] sm:$0xff] }
   0x3   :  { %v207_v7 = vpack.c.bf16 %v18_v5, %v17_v2  ;;  %v210_v10 = vpack.c.bf16 %v20_v9, %v19_v8  ;;  %v21_v11 = vld [vmem:[%s313_s1 + $0x30] sm:$0xff]  ;;  %v22_v12 = vld [vmem:[%s313_s1 + $0x38] sm:$0xff]  ;;  %v23_v14 = vld [vmem:[%s313_s1 + $0x40] sm:$0xff] }
   0x4   :  { %205 = vmatpush3.bf16.msra.mxu0 %v204_v4  ;;  %v213_v13 = vpack.c.bf16 %v22_v12, %v21_v11  ;;  %v24_v15 = vld [vmem:[%s313_s1 + $0x48] sm:$0xff]  ;;  %v25_v17 = vld [vmem:[%s313_s1 + $0x50] sm:$0xff]  ;;  %v26_v18 = vld [vmem:[%s313_s1 + $0x58] sm:$0xff] }
   0x5   :  { %206 = vmatprep.subr.bf16.mxu0 %v232_v3  ;;  %v216_v16 = vpack.c.bf16 %v24_v15, %v23_v14  ;;  %v219_v19 = vpack.c.bf16 %v26_v18, %v25_v17  ;;  %v27_v20 = vld [vmem:[%s313_s1 + $0x60] sm:$0xff]  ;;  %v28_v21 = vld [vmem:[%s313_s1 + $0x68] sm:$0xff]  ;;  %v29_v23 = vld [vmem:[%s313_s1 + $0x70] sm:$0xff] }
   0x6   :  { %v222_v22 = vpack.c.bf16 %v28_v21, %v27_v20  ;;  %v30_v24 = vld [vmem:[%s313_s1 + $0x78] sm:$0xff]  ;;  %v14_v26 = vld [vmem:[%s312_s0] sm:$0xff] }
   0x7   :  { %v225_v25 = vpack.c.bf16 %v30_v24, %v29_v23  ;;  %v150_v27 = vld [vmem:[%s314_s2] ss:$0 sm:$0xff] }
   0x8   :  { %208 = vmatpush3.bf16.msra.mxu0 %v207_v7 }
   0x9   :  { %209 = vmatprep.subr.bf16.mxu0 %v232_v3 }
   0xc   :  { %211 = vmatpush3.bf16.msra.mxu0 %v210_v10 }
   0xd   :  { %212 = vmatprep.subr.bf16.mxu0 %v232_v3 }
  0x10   :  { %214 = vmatpush3.bf16.msra.mxu0 %v213_v13 }
  0x11   :  { %215 = vmatprep.subr.bf16.mxu0 %v232_v3 }
  0x14   :  { %217 = vmatpush3.bf16.msra.mxu0 %v216_v16 }
  0x15   :  { %218 = vmatprep.subr.bf16.mxu0 %v232_v3 }
  0x18   :  { %220 = vmatpush3.bf16.msra.mxu0 %v219_v19 }
  0x19   :  { %221 = vmatprep.subr.bf16.mxu0 %v232_v3 }
  0x1c   :  { %223 = vmatpush3.bf16.msra.mxu0 %v222_v22 }
  0x1d   :  { %224 = vmatprep.subr.bf16.mxu0 %v232_v3 }
  0x20   :  { %226 = vmatpush3.bf16.msra.mxu0 %v225_v25 }
  0x23   :  { %201 = vmatmul.mubr.f32.vlgmr.msra.gmra.mrb[0].mxu0 %v14_v26 }
  0xf6   :  { %v104_v28 = vpop.f32.mrb[0].mxu0 }
  0xf7   :  { %v105_v29 = vadd.f32 %v150_v27, %v104_v28  ;;  %v202_v30 = vpop.f32.mrb[1].mxu0 }
  0xf9   :  { %230 = vtanh.f32 %v105_v29 }
 0x103   :  { %v231_v31 = vpop.eup %230 }
 0x104   :  { %110 = vst.msk [vmem:[#allocation2] sm:$0xff] %vm109_vm1, %v231_v31 }
 0x10b   :  { %v128_v32 = vld [vmem:[#allocation2] sm:$0xf] }
 0x10c   :  { %129 = vst [vmem:[%s315_s3] sm:$0xf] %v128_v32 }

</bundles_post_ra>
